<compile_context>
chip_gen: v7x
topology: tpu7x:2x2x1
jax: 0.10.0
libtpu: 0.0.40
codegen_flags: <defaults>
</compile_context>

<pallas_src>
import functools
import math

import numpy as np
import jax
import jax.numpy as jnp
from jax import lax
from jax.experimental import pallas as pl
from jax.experimental.pallas import tpu as pltpu


# ~512 KiB of f32 payload per gradient row per tile -> a K=4 block is ~2 MiB
# per DMA.  Scaled by dtype below so bf16 tiles carry the same BYTES.
# VMEM: a (K, tile_d) block is physically padded to 8 (f32) / 16 (bf16)
# sublanes, i.e. 32*tile_d bytes either way; the combine kernel double-buffers
# one input + one output block -> 128*tile_d bytes = 16 MiB (f32, 131072) /
# 32 MiB (bf16, 262144): comfortably under v7x's 64 MiB physical VMEM and far
# below v5e/v6e's 128 MiB.
_MAX_TILE_D_F32 = 131072
_VMEM_LIMIT_BYTES = 48 << 20


def _cdiv(a, b):
    return -(-a // b)


def _round_up(x, m):
    return ((x + m - 1) // m) * m


def _num_tensorcores_per_chip():
    """TensorCores sharing one chip's HBM: 2 on v7x, 1 on v5e/v6e."""
    try:
        kind = jax.devices()[0].device_kind.lower()
    except Exception:
        return 1
    return 2 if ("v7" in kind or "7x" in kind) else 1


# ----------------------------------------------------------------------------
# Pallas kernels
# ----------------------------------------------------------------------------
def _gram_kernel(g_ref, gg_ref, *, d, tile_d, tiles_per_core, first_masked_tile):
    """Per-core partial Gram: gg[c] += G_tile @ G_tile^T, reduced over j."""
    c = pl.program_id(0)
    j = pl.program_id(1)

    @pl.when(j == 0)
    def _():
        gg_ref[...] = jnp.zeros_like(gg_ref)

    def accumulate(g):
        # Contract the tile_d (lane) axis of both operands directly — no
        # transpose / cross-lane shuffle of the (K, tile_d) tile.
        gg_ref[...] += lax.dot_general(
            g, g,
            dimension_numbers=(((1,), (1,)), ((), ())),
            preferred_element_type=jnp.float32,
        )[None, :, :]

    if first_masked_tile is None:
        # D is tile-aligned and there are no clamped tail tiles: fast path only.
        accumulate(g_ref[...])
    else:
        tile_idx = c * tiles_per_core + j
        needs_mask = tile_idx >= first_masked_tile

        # Fast path: interior tiles pay zero VPU masking cost.
        @pl.when(jnp.logical_not(needs_mask))
        def _():
            accumulate(g_ref[...])

        # Slow path: only the (at most one per core) partial / clamped tile.
        @pl.when(needs_mask)
        def _():
            g = g_ref[...]
            col = lax.broadcasted_iota(jnp.int32, g.shape, 1)
            # Logical (unclamped) start: zeroes the padding lanes of the true
            # last tile AND everything in a fully out-of-range clamped tile.
            g = jnp.where(tile_idx * tile_d + col < d, g, jnp.zeros_like(g))
            accumulate(g)


def _combine_kernel(m_ref, g_ref, o_ref):
    """out_tile = M @ G_tile.  M stays f32; only the result is cast down."""
    o_ref[...] = jnp.dot(
        m_ref[...], g_ref[...].astype(jnp.float32),
        preferred_element_type=jnp.float32,
    ).astype(o_ref.dtype)


def _gram_pallas(g, tile_d, num_cores):
    k, d = g.shape
    itemsize = g.dtype.itemsize
    n_tiles = _cdiv(d, tile_d)
    tiles_per_core = _cdiv(n_tiles, num_cores)
    has_clamped = num_cores * tiles_per_core > n_tiles

    if d % tile_d != 0:
        first_masked_tile = n_tiles - 1   # partial last tile (+ clamped dup, if any)
    elif has_clamped:
        first_masked_tile = n_tiles       # only fully out-of-range clamped tiles
    else:
        first_masked_tile = None          # nothing to mask — always fast path

    kernel = functools.partial(
        _gram_kernel, d=d, tile_d=tile_d,
        tiles_per_core=tiles_per_core, first_masked_tile=first_masked_tile)

    if has_clamped:
        def g_index(c, j):
            # Clamp so the (fully masked) out-of-range tail tile re-reads the
            # last valid block instead of issuing an OOB DMA.
            return (0, jnp.minimum(c * tiles_per_core + j, n_tiles - 1))
    else:
        def g_index(c, j):
            return (0, c * tiles_per_core + j)

    if num_cores > 1:
        dim_sem = (pltpu.CORE_PARALLEL, pltpu.ARBITRARY)
    else:
        dim_sem = ("arbitrary", "arbitrary")

    cost = pl.CostEstimate(
        flops=2 * k * k * d,
        transcendentals=0,
        bytes_accessed=k * d * itemsize + num_cores * k * k * 4)

    gg_partials = pl.pallas_call(
        kernel,
        out_shape=jax.ShapeDtypeStruct((num_cores, k, k), jnp.float32),
        grid_spec=pltpu.PrefetchScalarGridSpec(
            num_scalar_prefetch=0,
            grid=(num_cores, tiles_per_core),
            in_specs=[pl.BlockSpec((k, tile_d), g_index)],
            out_specs=pl.BlockSpec((1, k, k), lambda c, j: (c, 0, 0)),
        ),
        compiler_params=pltpu.CompilerParams(
            dimension_semantics=dim_sem,
            vmem_limit_bytes=_VMEM_LIMIT_BYTES,
        ),
        cost_estimate=cost,
    )(g)
    # Tiny (num_cores, K, K) reduction of the per-core partials.
    return jnp.sum(gg_partials, axis=0)


def _combine_pallas(m, g, tile_d, num_cores):
    k, d = g.shape
    itemsize = g.dtype.itemsize
    n_tiles = _cdiv(d, tile_d)
    cost = pl.CostEstimate(
        flops=2 * k * k * d,
        transcendentals=0,
        bytes_accessed=2 * k * d * itemsize + k * k * 4)

    if num_cores > 1:
        # Combine carries 2/3 of the total HBM bytes (reads + writes K*D), so
        # on v7x it is the dominant kernel to shard across TensorCores.
        tiles_per_core = _cdiv(n_tiles, num_cores)
        has_clamped = num_cores * tiles_per_core > n_tiles
        if has_clamped:
            def tile_index(c, j):
                # The clamped duplicate re-reads and re-writes the SAME last
                # block of its own core with identical values — idempotent,
                # and no cross-core writes (guaranteed by n_tiles >= cores).
                return jnp.minimum(c * tiles_per_core + j, n_tiles - 1)
        else:
            def tile_index(c, j):
                return c * tiles_per_core + j

        grid = (num_cores, tiles_per_core)
        in_specs = [
            pl.BlockSpec((k, k), lambda c, j: (0, 0)),
            pl.BlockSpec((k, tile_d), lambda c, j: (0, tile_index(c, j))),
        ]
        out_spec = pl.BlockSpec((k, tile_d), lambda c, j: (0, tile_index(c, j)))
        dim_sem = (pltpu.CORE_PARALLEL, pltpu.ARBITRARY)
    else:
        grid = (n_tiles,)
        in_specs = [
            pl.BlockSpec((k, k), lambda i: (0, 0)),
            pl.BlockSpec((k, tile_d), lambda i: (0, i)),
        ]
        out_spec = pl.BlockSpec((k, tile_d), lambda i: (0, i))
        dim_sem = ("parallel",)

    # No masking needed: each output column depends only on the matching
    # input column; out-of-bounds lanes of the last tile are dropped by
    # Pallas on writeback.
    return pl.pallas_call(
        _combine_kernel,
        out_shape=jax.ShapeDtypeStruct((k, d), g.dtype),
        grid_spec=pltpu.PrefetchScalarGridSpec(
            num_scalar_prefetch=0,
            grid=grid,
            in_specs=in_specs,
            out_specs=out_spec,
        ),
        compiler_params=pltpu.CompilerParams(
            dimension_semantics=dim_sem,
            vmem_limit_bytes=_VMEM_LIMIT_BYTES,
        ),
        cost_estimate=cost,
    )(m, g)


def _gram(g, tile_d, num_cores):
    if num_cores > 1:
        try:
            return jax.block_until_ready(_gram_pallas(g, tile_d, num_cores))
        except Exception:
            # CORE_PARALLEL not accepted on this chip / jax build — run the
            # single-core reduction instead (correctness unaffected).
            pass
    return _gram_pallas(g, tile_d, 1)


def _combine(m, g, tile_d, num_cores):
    if num_cores > 1:
        try:
            return jax.block_until_ready(_combine_pallas(m, g, tile_d, num_cores))
        except Exception:
            pass
    return _combine_pallas(m, g, tile_d, 1)


# ----------------------------------------------------------------------------
# Host-side solver for the simplex-constrained sub-problem
# ----------------------------------------------------------------------------
def _project_simplex(v):
    """Euclidean projection onto {x : x >= 0, sum(x) = 1}."""
    u = np.sort(v)[::-1]
    css = np.cumsum(u)
    idx = np.arange(1, len(v) + 1)
    rho = np.nonzero(u + (1.0 - css) / idx > 0)[0][-1]
    theta = (1.0 - css[rho]) / (rho + 1.0)
    return np.maximum(v + theta, 0.0)


def _solve_cagrad_weights(A, c, num_iters=2000):
    """min_x  x^T A b + c * sqrt(x^T A x + 1e-8)  s.t. x on the simplex.

    # TODO(synk): scipy.optimize.minimize (SLSQP) has no Pallas/host-JAX
    # equivalent here; replaced with deterministic projected gradient descent
    # on the simplex (same constraint set, same objective).
    """
    A = np.asarray(A, dtype=np.float64)
    k = A.shape[0]
    b = np.ones(k) / k
    x = np.ones(k) / k
    Ab = A @ b
    scale = np.linalg.norm(A, 2) + c + 1e-8
    lr = 0.5 / scale
    for _ in range(num_iters):
        quad = float(x @ A @ x) + 1e-8
        grad = Ab + c * (A @ x) / math.sqrt(quad)
        x = _project_simplex(x - lr * grad)
    return x


# ----------------------------------------------------------------------------
# CAGrad forward
# ----------------------------------------------------------------------------
def cagrad_forward(grads, alpha, tile_d=None):
    """grads: (K, ...) array. Returns an array of the same shape/dtype."""
    shape = grads.shape
    k = int(shape[0])
    d = int(np.prod(shape[1:]))

    # Keep the native dtype (bf16 stays bf16) — both kernels are HBM-bound.
    g = jnp.asarray(grads).reshape(k, d)
    itemsize = g.dtype.itemsize

    if tile_d is None:
        # Constant bytes per tile regardless of dtype (~2 MiB per K=4 block).
        tile_d = _MAX_TILE_D_F32 * 4 // itemsize
    tile_d = max(128, min(_round_up(tile_d, 128), _round_up(d, 128)))

    n_tiles = _cdiv(d, tile_d)
    num_cores = _num_tensorcores_per_chip()
    if n_tiles < num_cores:
        num_cores = 1   # too little work to shard across TensorCores

    # --- Pallas kernel 1: Gram matrix GG = G G^T -----------------------------
    gg = _gram(g, tile_d, num_cores)
    gg_np = np.asarray(jax.device_get(gg), dtype=np.float64)

    # --- host scalar math (mirrors the torch .cpu() section) -----------------
    g0_norm = math.sqrt(gg_np.mean() + 1e-8)
    c = alpha * g0_norm + 1e-8
    w = _solve_cagrad_weights(gg_np, c)

    gw_norm = math.sqrt(max(float(w @ gg_np @ w), 0.0))
    lmbda = c / (gw_norm + 1e-8)

    # Fold "+ lmbda * gw" and "/ num_tasks" into one K x K matrix (kept f32):
    #   out[k, d] = (g[k, d] + lmbda * sum_j w[j] g[j, d]) / K
    m = (np.eye(k) + lmbda * np.outer(np.ones(k), w)) / float(k)
    m = jnp.asarray(m, dtype=jnp.float32)

    # --- Pallas kernel 2: out = M @ G over D tiles (final dtype in-kernel) ---
    out = _combine(m, g, tile_d, num_cores)
    return out.reshape(shape)


# ----------------------------------------------------------------------------
# Reference (pure numpy) for a sanity check of the Pallas parts
# ----------------------------------------------------------------------------
def _reference(grads_np, alpha):
    shape = grads_np.shape
    k = shape[0]
    g = grads_np.reshape(k, -1).astype(np.float64)
    gg = g @ g.T
    g0_norm = math.sqrt(gg.mean() + 1e-8)
    c = alpha * g0_norm + 1e-8
    w = _solve_cagrad_weights(gg, c)
    gw = (g * w[:, None]).sum(0)
    gw_norm = np.linalg.norm(gw)
    lmbda = c / (gw_norm + 1e-8)
    out = (g + lmbda * gw[None, :]) / k
    return out.reshape(shape).astype(grads_np.dtype)


if __name__ == "__main__":
    alpha = 0.5

    # Test 1: K=4 tasks, each gradient of shape (16, 128) -> D = 2048.
    # Single full tile, D tile-aligned -> unmasked fast path.
    grads = jax.random.normal(jax.random.PRNGKey(0), (4, 16, 128),
                              dtype=jnp.float32)
    out = jax.block_until_ready(cagrad_forward(grads, alpha))
    ref = _reference(np.asarray(grads), alpha)
    np.testing.assert_allclose(np.asarray(out), ref, rtol=1e-4, atol=1e-4)
    assert out.shape == grads.shape and out.dtype == grads.dtype

    # Test 2: K=3, ragged D = 5*37 = 185 (exercises the masked tail tile and
    # the dropped out-of-bounds output lanes — no padding pass anywhere).
    grads2 = jax.random.normal(jax.random.PRNGKey(1), (3, 5, 37),
                               dtype=jnp.float32)
    out2 = jax.block_until_ready(cagrad_forward(grads2, alpha))
    ref2 = _reference(np.asarray(grads2), alpha)
    np.testing.assert_allclose(np.asarray(out2), ref2, rtol=1e-4, atol=1e-4)
    assert out2.shape == grads2.shape and out2.dtype == grads2.dtype

    # Test 3: K=4, D = 13*137 = 1781 with a small explicit tile (512):
    # multi-tile grid, interior fast-path tiles + one masked tail tile, and
    # the 2-TensorCore split on multi-core chips.
    grads3 = jax.random.normal(jax.random.PRNGKey(2), (4, 13, 137),
                               dtype=jnp.float32)
    out3 = jax.block_until_ready(cagrad_forward(grads3, alpha, tile_d=512))
    ref3 = _reference(np.asarray(grads3), alpha)
    np.testing.assert_allclose(np.asarray(out3), ref3, rtol=1e-4, atol=1e-4)
    assert out3.shape == grads3.shape and out3.dtype == grads3.dtype

    print("KERNEL_OK")
</pallas_src>

<mosaic_0001>
module attributes {stable_mosaic.version = 11 : i64} {
  func.func @_gram_kernel(%arg0: i32, %arg1: i32, %arg2: memref<4x2048xf32, #tpu.memory_space<vmem>>, %arg3: memref<1x4x4xf32, #tpu.memory_space<vmem>>) attributes {dimension_semantics = [#tpu.dimension_semantics<arbitrary>, #tpu.dimension_semantics<arbitrary>], iteration_bounds = array<i64: 1, 1>, scalar_prefetch = 0 : i64, scratch_operands = 0 : i64, tpu.core_type = #tpu.core_type<tc>, window_params = [{transform_indices = @transform_0, window_bounds = array<i64: 4, 2048>}, {transform_indices = @transform_1, window_bounds = array<i64: 1, 4, 4>}]} {
    %c0_i32 = arith.constant 0 : i32
    %0 = arith.cmpi eq, %arg1, %c0_i32 : i32
    %1 = arith.extui %0 : i1 to i32
    %c0_i32_0 = arith.constant 0 : i32
    %2 = arith.cmpi ne, %1, %c0_i32_0 : i32
    scf.if %2 {
      %cst_8 = arith.constant 0.000000e+00 : f32
      %9 = vector.broadcast %cst_8 : f32 to vector<1x4x4xf32>
      %c0_9 = arith.constant 0 : index
      %c0_10 = arith.constant 0 : index
      %c0_11 = arith.constant 0 : index
      %10 = vector.load %arg3[%c0_9, %c0_10, %c0_11] : memref<1x4x4xf32, #tpu.memory_space<vmem>>, vector<1x4x4xf32>
      tpu.vector_store %arg3[%c0_9, %c0_10, %c0_11], %9 {strides = array<i32>} : memref<1x4x4xf32, #tpu.memory_space<vmem>>, vector<1x4x4xf32>,
    } else {
    }
    %c0 = arith.constant 0 : index
    %c0_1 = arith.constant 0 : index
    %3 = vector.load %arg2[%c0, %c0_1] : memref<4x2048xf32, #tpu.memory_space<vmem>>, vector<4x2048xf32>
    %c0_2 = arith.constant 0 : index
    %c0_3 = arith.constant 0 : index
    %c0_4 = arith.constant 0 : index
    %4 = vector.load %arg3[%c0_2, %c0_3, %c0_4] : memref<1x4x4xf32, #tpu.memory_space<vmem>>, vector<1x4x4xf32>
    %cst = arith.constant dense<0.000000e+00> : vector<4x4xf32>
    %5 = tpu.matmul %3, %3, %cst {dimension_numbers = #tpu.dot_dimension_numbers<[1], [1], [0], [0], [0, 0, 1, 0], [], []>} : vector<4x2048xf32>, vector<4x2048xf32>, vector<4x4xf32> -> vector<4x4xf32>
    %6 = vector.shape_cast %5 : vector<4x4xf32> to vector<1x4x4xf32>
    %7 = arith.addf %4, %6 : vector<1x4x4xf32>
    %c0_5 = arith.constant 0 : index
    %c0_6 = arith.constant 0 : index
    %c0_7 = arith.constant 0 : index
    %8 = vector.load %arg3[%c0_5, %c0_6, %c0_7] : memref<1x4x4xf32, #tpu.memory_space<vmem>>, vector<1x4x4xf32>
    tpu.vector_store %arg3[%c0_5, %c0_6, %c0_7], %7 {strides = array<i32>} : memref<1x4x4xf32, #tpu.memory_space<vmem>>, vector<1x4x4xf32>,
    return
  }
  func.func @transform_0(%arg0: i32, %arg1: i32) -> (i32, i32) {
    %c1_i32 = arith.constant 1 : i32
    %0 = arith.muli %arg0, %c1_i32 : i32
    %1 = arith.addi %0, %arg1 : i32
    %c0_i32 = arith.constant 0 : i32
    %c0_i32_0 = arith.constant 0 : i32
    return %c0_i32, %1 : i32, i32
  }
  func.func @transform_1(%arg0: i32, %arg1: i32) -> (i32, i32, i32) {
    %c0_i32 = arith.constant 0 : i32
    %c0_i32_0 = arith.constant 0 : i32
    %c0_i32_1 = arith.constant 0 : i32
    return %arg0, %c0_i32, %c0_i32_0 : i32, i32, i32
  }
}

</mosaic_0001>

<bundles_post_ra>
// kernel: tpu_custom_call.1
= control target key start
LH: loop header
LB: loop body
LE: loop exit
PB: predicated region body
PF: predicated region fallthrough
CT: control target
= control target key end

     0   :  { %6 = vsyncpa [#allocation3], 0  ;;  %s742_s0 = inlined_call_operand.hbm [shape: f32[4,2048], index: 0, kind: input, shape index: {}]   ;;  %s743_s1 = inlined_call_operand.hbm [shape: f32[1,4,4], index: 1, kind: output, shape index: {}]  }
   0x1   :  { %7 = vsyncpa [#allocation4], 0  ;;  %s703_s6 = smov [#allocation2]   ;;  %s655_s10 = scalar_lea.hbm %s742_s0, 1024 }
   0x2   :  { %s18_s7 = sshll.u32 %s703_s6, 4  ;;  %p656_p0 = scmp.ne.s32.totalorder %s742_s0, %s655_s10  ;;  %s19_s7 = int_to_ptr.vmem [resolvable:$true] %s18_s7 }
   0x3   :  { %p659_p1 = scmp.lt.u32.totalorder %s655_s10, %s742_s0 }
   0x5   :  { %p661_p2 = pnand %p659_p1, %p656_p0 }
   0x7   :  { %664 = shalt.err (!%p661_p2)
}
   0x8   :  { %s665_s15 = scalar_lea.vmem %s19_s7, 1024  ;;  %p670_p4 = scmp.lt.s32.totalorder %s19_s7, %s19_s7 }
   0x9   :  { %p666_p3 = scmp.ne.s32.totalorder %s19_s7, %s665_s15  ;;  %p671_p5 = scmp.lt.s32.totalorder %s665_s15, %s665_s15 }
   0xb   :  { %p672_p6 = por %p671_p5, %p670_p4 }
   0xd   :  { %p673_p7 = pnand %p672_p6, %p666_p3 }
   0xf   :  { %676 = shalt.err (!%p673_p7)
}
  0x10   :  { %21 = dma.hbm_to_vmem [thread:$0]  %s742_s0, 1024, %s19_s7, [#allocation3]  }
  0x11   :  { %699 = dma.done.wait [#allocation3], 1024  }
  0x12   :  { %700 = vsyncadd [#allocation3], 4294966272  ;;  %v33_v0 = vld [vmem:[#allocation2] sm:$0xff]  ;;  %v34_v1 = vld [vmem:[#allocation2 + $0x8] sm:$0xff]  ;;  %vm31_vm0 = vcmask 27648   ;;  %v704_v16 = vmov 0.0  }
  0x13   :  { %v35_v2 = vld [vmem:[#allocation2 + $0x10] sm:$0xff]  ;;  %v50_v3 = vcombine.high %v33_v0, %v33_v0  ;;  %v51_v4 = vcombine.high %v34_v1, %v34_v1  ;;  %v36_v5 = vld [vmem:[#allocation2 + $0x18] sm:$0xff]  ;;  %v37_v8 = vld [vmem:[#allocation2 + $0x20] sm:$0xff]  ;;  %32 = vst.msk [vmem:[#allocation5] sm:$0xf] %vm31_vm0, %v704_v16  ;;  %s705_s0 = smov [#allocation5]  }
  0x14   :  { %v52_v6 = vcombine.high %v35_v2, %v35_v2  ;;  %v53_v7 = vcombine.high %v36_v5, %v36_v5  ;;  %v38_v9 = vld [vmem:[#allocation2 + $0x28] sm:$0xff]  ;;  %v54_v10 = vcombine.high %v37_v8, %v37_v8  ;;  %v39_v12 = vld [vmem:[#allocation2 + $0x30] sm:$0xff]  ;;  %v40_v13 = vld [vmem:[#allocation2 + $0x38] sm:$0xff]  ;;  %s635_s18 = sshll.u32 %s705_s0, 4  ;;  %s636_s18 = int_to_ptr.vmem [resolvable:$true] %s635_s18 }
  0x15   :  { %66 = vmatprep.subr.mxu0 %v50_v3  ;;  %136 = vmatprep.subr.mxu1 %v51_v4  ;;  %v55_v11 = vcombine.high %v38_v9, %v38_v9  ;;  %v56_v14 = vcombine.high %v39_v12, %v39_v12  ;;  %v57_v15 = vcombine.high %v40_v13, %v40_v13  ;;  %s677_s19 = scalar_lea.vmem %s636_s18, 64  ;;  %p682_p9 = scmp.lt.s32.totalorder %s636_s18, %s636_s18 }
  0x16   :  { %67 = vmatpush1.xpose.msra.mxu0 %v33_v0  ;;  %137 = vmatpush1.xpose.msra.mxu1 %v34_v1  ;;  %p678_p8 = scmp.ne.s32.totalorder %s636_s18, %s677_s19  ;;  %p683_p10 = scmp.lt.s32.totalorder %s677_s19, %s677_s19 }
  0x17   :  { %130 = vmatprep.mubr.f32.mxu0 %v50_v3  ;;  %200 = vmatprep.mubr.f32.mxu1 %v51_v4 }
  0x18   :  { %206 = vmatprep.subr.mxu0 %v52_v6  ;;  %276 = vmatprep.subr.mxu1 %v53_v7  ;;  %p684_p11 = por %p683_p10, %p682_p9 }
  0x19   :  { %131 = vmatmul.mubr.f32.vlgmr.msra.gmra.mrb[0].mxu0 %v33_v0  ;;  %201 = vmatmul.mubr.f32.vlgmr.msra.gmra.mrb[0].mxu1 %v34_v1 }
  0x1a   :  { %207 = vmatpush1.xpose.msra.mxu0 %v35_v2  ;;  %270 = vmatprep.mubr.f32.mxu0 %v52_v6  ;;  %v41_v38 = vld [vmem:[#allocation5] sm:$0xf]  ;;  %p685_p12 = pnand %p684_p11, %p678_p8 }
  0x1b   :  { %277 = vmatpush1.xpose.msra.mxu1 %v36_v5  ;;  %346 = vmatprep.subr.mxu0 %v54_v10 }
  0x1c   :  { %340 = vmatprep.mubr.f32.mxu1 %v53_v7  ;;  %416 = vmatprep.subr.mxu1 %v55_v11 }
  0x1d   :  { %271 = vmatmul.mubr.f32.vlgmr.msra.gmra.mrb[2].mxu0 %v35_v2 }
  0x1e   :  { %347 = vmatpush1.xpose.msra.mxu0 %v37_v8  ;;  %341 = vmatmul.mubr.f32.vlgmr.msra.gmra.mrb[2].mxu1 %v36_v5 }
  0x1f   :  { %410 = vmatprep.mubr.f32.mxu0 %v54_v10  ;;  %417 = vmatpush1.xpose.msra.mxu1 %v38_v9 }
  0x20   :  { %486 = vmatprep.subr.mxu0 %v56_v14  ;;  %480 = vmatprep.mubr.f32.mxu1 %v55_v11 }
  0x21   :  { %411 = vmatmul.mubr.f32.vlgmr.msra.gmra.mrb[4].mxu0 %v37_v8  ;;  %556 = vmatprep.subr.mxu1 %v57_v15 }
  0x22   :  { %487 = vmatpush1.xpose.msra.mxu0 %v39_v12  ;;  %481 = vmatmul.mubr.f32.vlgmr.msra.gmra.mrb[4].mxu1 %v38_v9 }
  0x23   :  { %550 = vmatprep.mubr.f32.mxu0 %v56_v14  ;;  %557 = vmatpush1.xpose.msra.mxu1 %v40_v13 }
  0x24   :  { %620 = vmatprep.mubr.f32.mxu1 %v57_v15 }
  0x25   :  { %551 = vmatmul.mubr.f32.vlgmr.msra.gmra.mrb[6].mxu0 %v39_v12 }
  0x26   :  { %621 = vmatmul.mubr.f32.vlgmr.msra.gmra.mrb[6].mxu1 %v40_v13 }
  0xec   :  { %v132_v17 = vpop.f32.mrb[0].mxu0  ;;  %v202_v18 = vpop.f32.mrb[0].mxu1 }
  0xed   :  { %v134_v19 = vpop.f32.mrb[1].mxu0  ;;  %v203_v20 = vadd.f32 %v202_v18, %v132_v17  ;;  %v204_v21 = vpop.f32.mrb[1].mxu1 }
  0xf0   :  { %v272_v22 = vpop.f32.mrb[2].mxu0 }
  0xf1   :  { %v273_v23 = vadd.f32 %v272_v22, %v203_v20  ;;  %v274_v24 = vpop.f32.mrb[3].mxu0  ;;  %v342_v25 = vpop.f32.mrb[2].mxu1 }
  0xf2   :  { %v344_v26 = vpop.f32.mrb[3].mxu1 }
  0xf3   :  { %v343_v27 = vadd.f32 %v342_v25, %v273_v23 }
  0xf4   :  { %v412_v28 = vpop.f32.mrb[4].mxu0 }
  0xf5   :  { %v413_v29 = vadd.f32 %v412_v28, %v343_v27  ;;  %v414_v30 = vpop.f32.mrb[5].mxu0  ;;  %v482_v31 = vpop.f32.mrb[4].mxu1 }
  0xf6   :  { %v484_v32 = vpop.f32.mrb[5].mxu1 }
  0xf7   :  { %v483_v33 = vadd.f32 %v482_v31, %v413_v29 }
  0xf8   :  { %v552_v34 = vpop.f32.mrb[6].mxu0 }
  0xf9   :  { %v553_v35 = vadd.f32 %v552_v34, %v483_v33  ;;  %v554_v36 = vpop.f32.mrb[7].mxu0  ;;  %v622_v37 = vpop.f32.mrb[6].mxu1 }
  0xfa   :  { %v624_v39 = vpop.f32.mrb[7].mxu1 }
  0xfb   :  { %v623_v40 = vadd.f32 %v622_v37, %v553_v35 }
  0xfd   :  { %v626_v41 = vadd.f32 %v623_v40, %v41_v38 }
  0xff   :  { %628 = vst.msk [vmem:[#allocation5] sm:$0xf] %vm31_vm0, %v626_v41 }
 0x100   :  { %688 = shalt.err (!%p685_p12)
}
 0x101   :  { %s689_s22 = scalar_lea.hbm %s743_s1, 64 }
 0x102   :  { %p690_p13 = scmp.ne.s32.totalorder %s743_s1, %s689_s22  ;;  %p693_p0 = scmp.lt.u32.totalorder %s689_s22, %s743_s1 }
 0x104   :  { %p695_p1 = pnand %p693_p0, %p690_p13 }
 0x106   :  { %698 = shalt.err (!%p695_p1)
}
 0x107   :  { %638 = dma.vmem_to_hbm [thread:$0]  %s636_s18, 64, %s743_s1, [#allocation4]  }
 0x108   :  { %701 = dma.done.wait [#allocation4], 64  }
 0x109   :  { %702 = vsyncadd [#allocation4], 4294967232 }
 0x10a   :  { %642 = vsyncpa [#allocation3], 1 }
 0x10b   :  { %643 = vsyncpa [#allocation4], 1 }

</bundles_post_ra>
